<compile_context>
chip_gen: v7x
topology: tpu7x:2x2x1
jax: 0.10.0
libtpu: 0.0.40
codegen_flags: <defaults>
</compile_context>

<pallas_src>
import jax
import jax.numpy as jnp
from jax.experimental import pallas as pl
from jax.experimental.pallas import tpu as pltpu


def _round_up(x, m):
    return ((x + m - 1) // m) * m


def _mlp_kernel(x_ref, w1_ref, b1_ref, w2_ref, b2_ref, o_ref):
    x = x_ref[...]
    # First linear layer on the MXU, f32 accumulation, f32 bias add.
    h = jnp.dot(x, w1_ref[...], preferred_element_type=jnp.float32) + b1_ref[...]
    # sigmoid(h) = 1 / (1 + exp(-h)): exp and reciprocal both live on the EUP slot
    # instead of a full-precision VALU divide.
    h = pl.reciprocal(1.0 + jnp.exp(-h), approx=False)
    # Second linear layer; casting the activation to the weight dtype is the deliberate
    # choice when running bf16 matmuls (f32 accumulation kept via preferred_element_type).
    y = jnp.dot(h.astype(w2_ref.dtype), w2_ref[...],
                preferred_element_type=jnp.float32) + b2_ref[...]
    o_ref[...] = y.astype(o_ref.dtype)


def _vmem_estimate(blk, n_in, n_hid_p, n_out_p, in_bytes, w_bytes, out_bytes):
    """Conservative VMEM footprint (assumes weights end up double-buffered)."""
    x_buf = 2 * blk * n_in * in_bytes              # double-buffered input stream
    o_buf = 2 * blk * n_out_p * out_bytes          # double-buffered output stream
    w_buf = 2 * (n_in * n_hid_p + n_hid_p * n_out_p) * w_bytes
    bias = 2 * (n_hid_p + n_out_p) * 4
    h_live = blk * n_hid_p * 4                     # f32 intermediate activation
    return x_buf + o_buf + w_buf + bias + h_live


def nn_gfe_forward(x, w1, b1, w2, b2, *, block_b=None, matmul_dtype=None,
                   vmem_limit_bytes=None):
    """Pallas forward pass of NN_GFE.

    x : (B, n_input)
    w1: (n_input, n_hidden)   b1: (n_hidden,)
    w2: (n_hidden, n_output)  b2: (n_output,)
    returns (B, n_output) in x's original dtype.
    """
    B, n_input = x.shape
    n_hidden = w1.shape[1]
    n_output = w2.shape[1]
    assert w1.shape == (n_input, n_hidden)
    assert b1.shape == (n_hidden,)
    assert w2.shape == (n_hidden, n_output)
    assert b2.shape == (n_output,)

    out_dtype = x.dtype

    # ---- lane-dense padding of the hidden / output feature dims (multiples of 128).
    # Padded hidden units see zero weights+bias -> sigmoid(0)=0.5, but they multiply
    # zero rows of the padded w2, so they contribute nothing. Padded output columns
    # and padded batch rows are sliced off below.
    n_hid_p = _round_up(n_hidden, 128)
    n_out_p = _round_up(n_output, 128)

    w1p = jnp.pad(w1, ((0, 0), (0, n_hid_p - n_hidden)))
    b1p = jnp.pad(b1, (0, n_hid_p - n_hidden)).reshape(1, n_hid_p).astype(jnp.float32)
    w2p = jnp.pad(w2, ((0, n_hid_p - n_hidden), (0, n_out_p - n_output)))
    b2p = jnp.pad(b2, (0, n_out_p - n_output)).reshape(1, n_out_p).astype(jnp.float32)

    # Optional bf16 matmul path (f32 accumulation stays inside the kernel).
    if matmul_dtype is not None:
        x = x.astype(matmul_dtype)
        w1p = w1p.astype(matmul_dtype)
        w2p = w2p.astype(matmul_dtype)

    in_bytes = jnp.dtype(x.dtype).itemsize
    w_bytes = jnp.dtype(w1p.dtype).itemsize
    out_bytes = jnp.dtype(out_dtype).itemsize

    # ---- batch tile selection: big enough to amortize per-grid-step overhead and
    # fill the MXU M dimension, small enough to fit the scoped VMEM budget.
    default_blk = 1024 if in_bytes <= 2 else 512
    blk = default_blk if block_b is None else block_b
    blk = min(blk, _round_up(B, 8))
    blk = max(8, (blk // 8) * 8)
    budget = vmem_limit_bytes if vmem_limit_bytes is not None else (32 << 20)
    while blk > 8 and _vmem_estimate(blk, n_input, n_hid_p, n_out_p,
                                     in_bytes, w_bytes, out_bytes) > 0.75 * budget:
        blk = max(8, ((blk // 2) // 8) * 8)

    B_pad = _round_up(B, blk)
    if B_pad != B:
        x = jnp.pad(x, ((0, B_pad - B), (0, 0)))
    grid = (B_pad // blk,)

    est = _vmem_estimate(blk, n_input, n_hid_p, n_out_p, in_bytes, w_bytes, out_bytes)
    vmem_limit = (vmem_limit_bytes if vmem_limit_bytes is not None
                  else int(min(64 << 20, max(32 << 20, 2 * est))))

    # TODO(synk): for n_hidden >= ~2048, add a second "arbitrary" grid axis chunking the
    # hidden dim (tile matmul-1's N / matmul-2's K) with a VMEM f32 accumulator instead of
    # materializing the full (block_b, n_hidden) activation.

    def _run(weight_pipeline_mode):
        def wspec(shape):
            # Constant block index across the grid -> single buffer is enough.
            if weight_pipeline_mode is None:
                return pl.BlockSpec(shape, lambda i: (0, 0))
            return pl.BlockSpec(shape, lambda i: (0, 0),
                                pipeline_mode=weight_pipeline_mode)

        return pl.pallas_call(
            _mlp_kernel,
            out_shape=jax.ShapeDtypeStruct((B_pad, n_out_p), out_dtype),
            grid_spec=pltpu.PrefetchScalarGridSpec(
                num_scalar_prefetch=0,
                grid=grid,
                in_specs=[
                    pl.BlockSpec((blk, n_input), lambda i: (i, 0)),
                    wspec((n_input, n_hid_p)),
                    wspec((1, n_hid_p)),
                    wspec((n_hid_p, n_out_p)),
                    wspec((1, n_out_p)),
                ],
                out_specs=pl.BlockSpec((blk, n_out_p), lambda i: (i, 0)),
            ),
            compiler_params=pltpu.CompilerParams(
                dimension_semantics=("parallel",),
                vmem_limit_bytes=int(vmem_limit),
            ),
        )(x, w1p, b1p, w2p, b2p)

    try:
        y = _run(pl.Buffered(1))
    except Exception:
        # Fallback if single-buffered pipeline_mode is unsupported on this jax version.
        y = _run(None)

    return y[:B, :n_output]


def _reference_forward(x, w1, b1, w2, b2):
    h = jax.nn.sigmoid(x @ w1 + b1)
    return h @ w2 + b2


if __name__ == "__main__":
    # Small shapes implied by NN_GFE(n_input, n_hidden, n_output).
    # B=20 (not a multiple of the tile) + block_b=8 exercises batch padding,
    # a multi-step grid (pipelined x-stream), and the lane-padding/slice path.
    B, n_input, n_hidden, n_output = 20, 32, 64, 16

    key = jax.random.PRNGKey(0)
    kx, k1, kb1, k2, kb2 = jax.random.split(key, 5)

    # Deterministic init mimicking torch.nn.Linear's U(-1/sqrt(fan_in), 1/sqrt(fan_in)).
    lim1 = 1.0 / jnp.sqrt(n_input)
    lim2 = 1.0 / jnp.sqrt(n_hidden)
    x = jax.random.normal(kx, (B, n_input), dtype=jnp.float32)
    w1 = jax.random.uniform(k1, (n_input, n_hidden), minval=-lim1, maxval=lim1,
                            dtype=jnp.float32)
    b1 = jax.random.uniform(kb1, (n_hidden,), minval=-lim1, maxval=lim1,
                            dtype=jnp.float32)
    w2 = jax.random.uniform(k2, (n_hidden, n_output), minval=-lim2, maxval=lim2,
                            dtype=jnp.float32)
    b2 = jax.random.uniform(kb2, (n_output,), minval=-lim2, maxval=lim2,
                            dtype=jnp.float32)

    y = nn_gfe_forward(x, w1, b1, w2, b2, block_b=8)
    y = jax.block_until_ready(y)

    y_ref = _reference_forward(x, w1, b1, w2, b2)
    assert y.shape == (B, n_output)
    assert jnp.allclose(y, y_ref, atol=1e-5, rtol=1e-5)

    print("KERNEL_OK")
</pallas_src>

<mosaic_0001>
module attributes {stable_mosaic.version = 11 : i64} {
  func.func @_mlp_kernel(%arg0: i32, %arg1: memref<8x32xf32, #tpu.memory_space<vmem>>, %arg2: memref<32x128xf32, #tpu.memory_space<vmem>>, %arg3: memref<1x128xf32, #tpu.memory_space<vmem>>, %arg4: memref<128x128xf32, #tpu.memory_space<vmem>>, %arg5: memref<1x128xf32, #tpu.memory_space<vmem>>, %arg6: memref<8x128xf32, #tpu.memory_space<vmem>>) attributes {dimension_semantics = [#tpu.dimension_semantics<parallel>], iteration_bounds = array<i64: 3>, scalar_prefetch = 0 : i64, scratch_operands = 0 : i64, tpu.core_type = #tpu.core_type<tc>, window_params = [{transform_indices = @transform_0, window_bounds = array<i64: 8, 32>}, {pipeline_mode = #tpu.pipeline_mode<synchronous>, transform_indices = @transform_1, window_bounds = array<i64: 32, 128>}, {pipeline_mode = #tpu.pipeline_mode<synchronous>, transform_indices = @transform_2, window_bounds = array<i64: 1, 128>}, {pipeline_mode = #tpu.pipeline_mode<synchronous>, transform_indices = @transform_3, window_bounds = array<i64: 128, 128>}, {pipeline_mode = #tpu.pipeline_mode<synchronous>, transform_indices = @transform_4, window_bounds = array<i64: 1, 128>}, {transform_indices = @transform_5, window_bounds = array<i64: 8, 128>}]} {
    %c0 = arith.constant 0 : index
    %c0_0 = arith.constant 0 : index
    %0 = vector.load %arg1[%c0, %c0_0] : memref<8x32xf32, #tpu.memory_space<vmem>>, vector<8x32xf32>
    %c0_1 = arith.constant 0 : index
    %c0_2 = arith.constant 0 : index
    %1 = vector.load %arg2[%c0_1, %c0_2] : memref<32x128xf32, #tpu.memory_space<vmem>>, vector<32x128xf32>
    %cst = arith.constant dense<0.000000e+00> : vector<8x128xf32>
    %2 = tpu.matmul %0, %1, %cst {dimension_numbers = #tpu.dot_dimension_numbers<[1], [0], [0], [1], [0, 0, 1, 1], [], []>} : vector<8x32xf32>, vector<32x128xf32>, vector<8x128xf32> -> vector<8x128xf32>
    %c0_3 = arith.constant 0 : index
    %c0_4 = arith.constant 0 : index
    %3 = vector.load %arg3[%c0_3, %c0_4] : memref<1x128xf32, #tpu.memory_space<vmem>>, vector<1x128xf32>
    %4 = vector.broadcast %3 : vector<1x128xf32> to vector<8x128xf32>
    %5 = arith.addf %2, %4 : vector<8x128xf32>
    %cst_5 = arith.constant 0.000000e+00 : f32
    %6 = vector.broadcast %cst_5 : f32 to vector<8x128xf32>
    %7 = arith.subf %6, %5 : vector<8x128xf32>
    %8 = math.exp %7 : vector<8x128xf32>
    %cst_6 = arith.constant 1.000000e+00 : f32
    %9 = vector.broadcast %cst_6 : f32 to vector<8x128xf32>
    %10 = arith.addf %9, %8 : vector<8x128xf32>
    %11 = tpu.reciprocal %10 : vector<8x128xf32> -> vector<8x128xf32>
    %c0_7 = arith.constant 0 : index
    %c0_8 = arith.constant 0 : index
    %12 = vector.load %arg4[%c0_7, %c0_8] : memref<128x128xf32, #tpu.memory_space<vmem>>, vector<128x128xf32>
    %cst_9 = arith.constant dense<0.000000e+00> : vector<8x128xf32>
    %13 = tpu.matmul %11, %12, %cst_9 {dimension_numbers = #tpu.dot_dimension_numbers<[1], [0], [0], [1], [0, 0, 1, 1], [], []>} : vector<8x128xf32>, vector<128x128xf32>, vector<8x128xf32> -> vector<8x128xf32>
    %c0_10 = arith.constant 0 : index
    %c0_11 = arith.constant 0 : index
    %14 = vector.load %arg5[%c0_10, %c0_11] : memref<1x128xf32, #tpu.memory_space<vmem>>, vector<1x128xf32>
    %15 = vector.broadcast %14 : vector<1x128xf32> to vector<8x128xf32>
    %16 = arith.addf %13, %15 : vector<8x128xf32>
    %c0_12 = arith.constant 0 : index
    %c0_13 = arith.constant 0 : index
    %17 = vector.load %arg6[%c0_12, %c0_13] : memref<8x128xf32, #tpu.memory_space<vmem>>, vector<8x128xf32>
    tpu.vector_store %arg6[%c0_12, %c0_13], %16 {strides = array<i32>} : memref<8x128xf32, #tpu.memory_space<vmem>>, vector<8x128xf32>,
    return
  }
  func.func @transform_0(%arg0: i32) -> (i32, i32) {
    %c0_i32 = arith.constant 0 : i32
    %c0_i32_0 = arith.constant 0 : i32
    return %arg0, %c0_i32 : i32, i32
  }
  func.func @transform_1(%arg0: i32) -> (i32, i32) {
    %c0_i32 = arith.constant 0 : i32
    %c0_i32_0 = arith.constant 0 : i32
    %c0_i32_1 = arith.constant 0 : i32
    return %c0_i32, %c0_i32_0 : i32, i32
  }
  func.func @transform_2(%arg0: i32) -> (i32, i32) {
    %c0_i32 = arith.constant 0 : i32
    %c0_i32_0 = arith.constant 0 : i32
    %c0_i32_1 = arith.constant 0 : i32
    return %c0_i32, %c0_i32_0 : i32, i32
  }
  func.func @transform_3(%arg0: i32) -> (i32, i32) {
    %c0_i32 = arith.constant 0 : i32
    %c0_i32_0 = arith.constant 0 : i32
    %c0_i32_1 = arith.constant 0 : i32
    return %c0_i32, %c0_i32_0 : i32, i32
  }
  func.func @transform_4(%arg0: i32) -> (i32, i32) {
    %c0_i32 = arith.constant 0 : i32
    %c0_i32_0 = arith.constant 0 : i32
    %c0_i32_1 = arith.constant 0 : i32
    return %c0_i32, %c0_i32_0 : i32, i32
  }
  func.func @transform_5(%arg0: i32) -> (i32, i32) {
    %c0_i32 = arith.constant 0 : i32
    %c0_i32_0 = arith.constant 0 : i32
    return %arg0, %c0_i32 : i32, i32
  }
}

module attributes {stable_mosaic.version = 11 : i64} {
  func.func @_mlp_kernel(%arg0: i32, %arg1: memref<8x32xf32, #tpu.memory_space<vmem>>, %arg2: memref<32x128xf32, #tpu.memory_space<vmem>>, %arg3: memref<1x128xf32, #tpu.memory_space<vmem>>, %arg4: memref<128x128xf32, #tpu.memory_space<vmem>>, %arg5: memref<1x128xf32, #tpu.memory_space<vmem>>, %arg6: memref<8x128xf32, #tpu.memory_space<vmem>>) attributes {dimension_semantics = [#tpu.dimension_semantics<parallel>], iteration_bounds = array<i64: 3>, scalar_prefetch = 0 : i64, scratch_operands = 0 : i64, tpu.core_type = #tpu.core_type<tc>, window_params = [{transform_indices = @transform_0, window_bounds = array<i64: 8, 32>}, {pipeline_mode = #tpu.pipeline_mode<synchronous>, transform_indices = @transform_1, window_bounds = array<i64: 32, 128>}, {pipeline_mode = #tpu.pipeline_mode<synchronous>, transform_indices = @transform_2, window_bounds = array<i64: 1, 128>}, {pipeline_mode = #tpu.pipeline_mode<synchronous>, transform_indices = @transform_3, window_bounds = array<i64: 128, 128>}, {pipeline_mode = #tpu.pipeline_mode<synchronous>, transform_indices = @transform_4, window_bounds = array<i64: 1, 128>}, {transform_indices = @transform_5, window_bounds = array<i64: 8, 128>}]} {
    %c0 = arith.constant 0 : index
    %c0_0 = arith.constant 0 : index
    %0 = vector.load %arg1[%c0, %c0_0] : memref<8x32xf32, #tpu.memory_space<vmem>>, vector<8x32xf32>
    %c0_1 = arith.constant 0 : index
    %c0_2 = arith.constant 0 : index
    %1 = vector.load %arg2[%c0_1, %c0_2] : memref<32x128xf32, #tpu.memory_space<vmem>>, vector<32x128xf32>
    %cst = arith.constant dense<0.000000e+00> : vector<8x128xf32>
    %2 = tpu.matmul %0, %1, %cst {dimension_numbers = #tpu.dot_dimension_numbers<[1], [0], [0], [1], [0, 0, 1, 1], [], []>} : vector<8x32xf32>, vector<32x128xf32>, vector<8x128xf32> -> vector<8x128xf32>
    %c0_3 = arith.constant 0 : index
    %c0_4 = arith.constant 0 : index
    %3 = vector.load %arg3[%c0_3, %c0_4] : memref<1x128xf32, #tpu.memory_space<vmem>>, vector<1x128xf32>
    %4 = vector.broadcast %3 : vector<1x128xf32> to vector<8x128xf32>
    %5 = arith.addf %2, %4 : vector<8x128xf32>
    %cst_5 = arith.constant 0.000000e+00 : f32
    %6 = vector.broadcast %cst_5 : f32 to vector<8x128xf32>
    %7 = arith.subf %6, %5 : vector<8x128xf32>
    %8 = math.exp %7 : vector<8x128xf32>
    %cst_6 = arith.constant 1.000000e+00 : f32
    %9 = vector.broadcast %cst_6 : f32 to vector<8x128xf32>
    %10 = arith.addf %9, %8 : vector<8x128xf32>
    %11 = tpu.reciprocal %10 : vector<8x128xf32> -> vector<8x128xf32>
    %c0_7 = arith.constant 0 : index
    %c0_8 = arith.constant 0 : index
    %12 = vector.load %arg4[%c0_7, %c0_8] : memref<128x128xf32, #tpu.memory_space<vmem>>, vector<128x128xf32>
    %cst_9 = arith.constant dense<0.000000e+00> : vector<8x128xf32>
    %13 = tpu.matmul %11, %12, %cst_9 {dimension_numbers = #tpu.dot_dimension_numbers<[1], [0], [0], [1], [0, 0, 1, 1], [], []>} : vector<8x128xf32>, vector<128x128xf32>, vector<8x128xf32> -> vector<8x128xf32>
    %c0_10 = arith.constant 0 : index
    %c0_11 = arith.constant 0 : index
    %14 = vector.load %arg5[%c0_10, %c0_11] : memref<1x128xf32, #tpu.memory_space<vmem>>, vector<1x128xf32>
    %15 = vector.broadcast %14 : vector<1x128xf32> to vector<8x128xf32>
    %16 = arith.addf %13, %15 : vector<8x128xf32>
    %c0_12 = arith.constant 0 : index
    %c0_13 = arith.constant 0 : index
    %17 = vector.load %arg6[%c0_12, %c0_13] : memref<8x128xf32, #tpu.memory_space<vmem>>, vector<8x128xf32>
    tpu.vector_store %arg6[%c0_12, %c0_13], %16 {strides = array<i32>} : memref<8x128xf32, #tpu.memory_space<vmem>>, vector<8x128xf32>,
    return
  }
  func.func @transform_0(%arg0: i32) -> (i32, i32) {
    %c0_i32 = arith.constant 0 : i32
    %c0_i32_0 = arith.constant 0 : i32
    return %arg0, %c0_i32 : i32, i32
  }
  func.func @transform_1(%arg0: i32) -> (i32, i32) {
    %c0_i32 = arith.constant 0 : i32
    %c0_i32_0 = arith.constant 0 : i32
    %c0_i32_1 = arith.constant 0 : i32
    return %c0_i32, %c0_i32_0 : i32, i32
  }
  func.func @transform_2(%arg0: i32) -> (i32, i32) {
    %c0_i32 = arith.constant 0 : i32
    %c0_i32_0 = arith.constant 0 : i32
    %c0_i32_1 = arith.constant 0 : i32
    return %c0_i32, %c0_i32_0 : i32, i32
  }
  func.func @transform_3(%arg0: i32) -> (i32, i32) {
    %c0_i32 = arith.constant 0 : i32
    %c0_i32_0 = arith.constant 0 : i32
    %c0_i32_1 = arith.constant 0 : i32
    return %c0_i32, %c0_i32_0 : i32, i32
  }
  func.func @transform_4(%arg0: i32) -> (i32, i32) {
    %c0_i32 = arith.constant 0 : i32
    %c0_i32_0 = arith.constant 0 : i32
    %c0_i32_1 = arith.constant 0 : i32
    return %c0_i32, %c0_i32_0 : i32, i32
  }
  func.func @transform_5(%arg0: i32) -> (i32, i32) {
    %c0_i32 = arith.constant 0 : i32
    %c0_i32_0 = arith.constant 0 : i32
    return %arg0, %c0_i32 : i32, i32
  }
}

</mosaic_0001>

<bundles_post_ra>
// kernel: tpu_custom_call.1
= control target key start
LH: loop header
LB: loop body
LE: loop exit
PB: predicated region body
PF: predicated region fallthrough
CT: control target
= control target key end

     0   :  { %10 = vsyncpa [#allocation3], 0  ;;  %s1177_s0 = inlined_call_operand.hbm [shape: f32[24,32], index: 0, kind: input, shape index: {}]   ;;  %s1178_s1 = inlined_call_operand.hbm [shape: f32[32,128], index: 1, kind: input, shape index: {}]   ;;  %s1179_s2 = inlined_call_operand.vmem [shape: f32[1,128], index: 2, kind: input, shape index: {}]   ;;  %s1180_s3 = inlined_call_operand.hbm [shape: f32[128,128], index: 3, kind: input, shape index: {}]   ;;  %s1181_s4 = inlined_call_operand.vmem [shape: f32[1,128], index: 4, kind: input, shape index: {}]   ;;  %s1182_s5 = inlined_call_operand.hbm [shape: f32[24,128], index: 5, kind: output, shape index: {}]  }
   0x1   :  { %12 = vsyncpa [#allocation3 + $0x1], 0 }
   0x2   :  { %13 = vsyncpa [#allocation6], 0 }
   0x3   :  { %14 = vsyncpa [#allocation4], 0 }
   0x4   :  { %16 = vsyncpa [#allocation4 + $0x1], 0  ;;  %s947_s18 = smov 0   ;;  %s949_s19 = smov 0  }
   0x5   :  { %s951_s20 = smov 0   ;;  %s953_s21 = smov 0  }
   0x6 LB: > { %s968_s22 = sadd.s32 4294967295, %s906_s21   ;;  %s557_s23 = sadd.s32 4294967294, %s906_s21   ;;  %s906_s21 = sphi %s953_s21, %s1201_s21   ;;  %s902_s20 = sphi %s951_s20, %s1200_s20   ;;  %s898_s19 = sphi %s949_s19, %s1199_s19   ;;  %s894_s18 = sphi %s947_s18, %s1198_s18  }
   0x7   : > { %p42_p0 = scmp.ne.s32.totalorder %s898_s19, %s894_s18  ;;  %p1183_p1 = scmp.eq.s32.totalorder %s968_s22, 0 }
   0x8   : > { %p156_p3 = scmp.eq.s32.totalorder %s557_s23, 2  ;;  %p558_p5 = scmp.ge.s32.totalorder %s906_s21, 1 }
   0x9   : > { %p977_p4 = por %p1183_p1, %p42_p0  ;;  %p163_p7 = scmp.lt.s32.totalorder %s906_s21, 4 }
   0xa   : > { %p982_p6 = por %p156_p3, %p42_p0  ;;  %s908_s27 = smov [#allocation5]  }
   0xb   : > { %s1186_s24 = scalar_select %p977_p4, 1, 0 }
   0xc   : > { %s1187_s25 = scalar_select %p982_p6, 1, 0 }
   0xd   : > { %p987_p8 = pnand %p558_p5, %p163_p7  ;;  %s175_s28 = sshll.u32 %s908_s27, 4  ;;  %s176_s28 = int_to_ptr.vmem [resolvable:$true] %s175_s28 }
   0xe   : > { %s909_s30 = smov [#allocation7]   ;;  %s750_s9 = scalar_lea.hbm %s1178_s1, 512 }
   0xf   : > { %s1188_s26 = scalar_select %p987_p8, 1, 0 }
  0x10   : > { %p686_p9 = pneg %p987_p8  ;;  %s191_s6 = sshll.u32 %s909_s30, 4  ;;  %s999_s6 = int_to_ptr.vmem [resolvable:$true] %s191_s6 }
  0x11   : > { %p751_p11 = scmp.ne.s32.totalorder %s1178_s1, %s750_s9  ;;  %p757_p3 = scmp.lt.u32.totalorder %s750_s9, %s1178_s1 }
  0x12   : > { %p995_p10 = pnand %p686_p9, %p1183_p1 }
  0x14   : > { %p752_p12 = pneg %p995_p10 }
  0x16   : > { %p753_p13 = pnand %p752_p12, %p751_p11 }
  0x18   : > { %p754_p0 = pneg %p753_p13 }
  0x1a   : > { %p759_p5 = pnand %p757_p3, %p754_p0 }
  0x1c   : > { %762 = shalt.err (!%p759_p5)
}
  0x1d   : > { %s763_s14 = scalar_lea.vmem %s176_s28, 512  ;;  %p771_p2 = scmp.lt.s32.totalorder %s176_s28, %s176_s28 }
  0x1e   : > { %p764_p7 = scmp.ne.s32.totalorder %s176_s28, %s763_s14  ;;  %p772_p6 = scmp.lt.s32.totalorder %s763_s14, %s763_s14 }
  0x20   : > { %p766_p9 = pnand %p764_p7, %p752_p12  ;;  %p773_p4 = por %p772_p6, %p771_p2 }
  0x22   : > { %p767_p1 = pneg %p766_p9 }
  0x24   : > { %p774_p8 = pnand %p773_p4, %p767_p1 }
  0x26   : > { %777 = shalt.err (!%p774_p8)
}
  0x27   : > { %s910_s15 = smov 128   ;;  %s911_s16 = smov 8  }
  0x28   : > { %689 = dma.hbm_to_vmem [thread:$0]  (!%p995_p10), %s1178_s1, 512, %s176_s28, [#allocation6], %s910_s15, %s910_s15, %s911_s16  }
  0x29   : > { %s778_s7 = scalar_lea.hbm %s1180_s3, 2048 }
  0x2a   : > { %p779_p11 = scmp.ne.s32.totalorder %s1180_s3, %s778_s7  ;;  %p785_p4 = scmp.lt.u32.totalorder %s778_s7, %s1180_s3 }
  0x2c   : > { %p781_p1 = pnand %p779_p11, %p752_p12 }
  0x2e   : > { %p782_p2 = pneg %p781_p1 }
  0x30   : > { %p787_p6 = pnand %p785_p4, %p782_p2 }
  0x32   : > { %790 = shalt.err (!%p787_p6)
}
  0x33   : > { %s791_s28 = scalar_lea.vmem %s999_s6, 2048  ;;  %p799_p3 = scmp.lt.s32.totalorder %s999_s6, %s999_s6 }
  0x34   : > { %p792_p8 = scmp.ne.s32.totalorder %s999_s6, %s791_s28  ;;  %p800_p5 = scmp.lt.s32.totalorder %s791_s28, %s791_s28 }
  0x36   : > { %p794_p13 = pnand %p792_p8, %p752_p12  ;;  %p801_p7 = por %p800_p5, %p799_p3 }
  0x38   : > { %p795_p0 = pneg %p794_p13 }
  0x3a   : > { %p802_p9 = pnand %p801_p7, %p795_p0 }
  0x3c   : > { %805 = shalt.err (!%p802_p9)
}
  0x3d   : > { %692 = dma.hbm_to_vmem [thread:$0]  (!%p995_p10), %s1180_s3, 2048, %s999_s6, [#allocation6], %s910_s15, %s910_s15, %s911_s16  }
  0x3e   : > { %s1049_s14 = sadd.s32 1, %s906_s21   ;;  %s29_s29 = sadd.s32 1, %s902_s20 }
  0x3f   : > { %s26_s17 = ssub.s32 %s906_s21, %s1049_s14  ;;  %p36_p12 = scmp.ne.s32.totalorder %s902_s20, %s898_s19 }
  0x40   : > { %p27_p11 = scmp.eq.s32.totalorder %s26_s17, 0  ;;  %p37_p1 = scmp.eq.s32.totalorder %s906_s21, 0 }
  0x41   : > { %p1190_p2 = scmp.eq.s32.totalorder %s968_s22, 2  ;;  %p703_p6 = scmp.lt.s32.totalorder %s906_s21, 3 }
  0x42   : > { %s1065_s27 = scalar_select %p27_p11, %s902_s20, %s29_s29  }
  0x43   : > { %p1059_p4 = por %p1190_p2, %p36_p12  ;;  %p38_p8 = por %p37_p1, %p36_p12 }
  0x44   : > { %s208_s30 = sand.u32 1, %s902_s20   ;;  %s563_s6 = sshll.u32 %s906_s21, 7 }
  0x45   : > { %s562_s7 = sshll.u32 %s208_s30, 3  ;;  %s1072_s8 = scalar_lea.hbm %s1177_s0, %s563_s6 }
  0x46   : > { %s212_s9 = scalar_lea.vmem [#allocation2], %s562_s7  ;;  %p1076_p10 = pnand %p703_p6, %p38_p8 }
  0x47   : > { %s219_s10 = sshll.u32 %s212_s9, 4  ;;  %s209_s28 = scalar_lea.sflag [#allocation3], %s208_s30  ;;  %s1074_s10 = int_to_ptr.vmem [resolvable:$true] %s219_s10 }
  0x48   : > { %s806_s12 = scalar_lea.hbm %s1072_s8, 128  ;;  %p808_p0 = pneg %p1076_p10 }
  0x49   : > { %p807_p13 = scmp.ne.s32.totalorder %s1072_s8, %s806_s12  ;;  %s811_s17 = scalar_lea.hbm %s1177_s0, 384 }
  0x4a   : > { %p812_p7 = scmp.lt.u32.totalorder %s1072_s8, %s1177_s0  ;;  %p813_p9 = scmp.lt.u32.totalorder %s811_s17, %s806_s12 }
  0x4b   : > { %p809_p3 = pnand %p808_p0, %p807_p13  ;;  %p815_p11 = scmp.lt.u32.totalorder %s806_s12, %s1072_s8 }
  0x4c   : > { %p814_p12 = por %p813_p9, %p812_p7 }
  0x4d   : > { %p810_p5 = pneg %p809_p3 }
  0x4e   : > { %p816_p1 = por %p815_p11, %p814_p12 }
  0x50   : > { %p817_p2 = pnand %p816_p1, %p810_p5 }
  0x52   : > { %820 = shalt.err (!%p817_p2)
}
  0x53   : > { %s821_s30 = scalar_lea.vmem %s1074_s10, 128  ;;  %s912_s15 = smov [#allocation2]  }
  0x54   : > { %p822_p6 = scmp.ne.s32.totalorder %s1074_s10, %s821_s30  ;;  %s826_s16 = sshll.u32 %s912_s15, 4  ;;  %s827_s16 = int_to_ptr.vmem [resolvable:$false] %s826_s16 }
  0x55   : > { %s828_s9 = scalar_lea.vmem %s827_s16, 256  ;;  %p829_p3 = scmp.lt.s32.totalorder %s1074_s10, %s827_s16 }
  0x56   : > { %p824_p8 = pnand %p822_p6, %p808_p0  ;;  %p830_p7 = scmp.lt.s32.totalorder %s828_s9, %s821_s30 }
  0x58   : > { %p825_p13 = pneg %p824_p8  ;;  %p831_p9 = por %p830_p7, %p829_p3 }
  0x5a   : > { %p832_p12 = pnand %p831_p9, %p825_p13 }
  0x5c   : > { %835 = shalt.err (!%p832_p12)
}
  0x5d   : > { %696 = dma.hbm_to_vmem [thread:$0]  (!%p1076_p10), %s1072_s8, 128, %s1074_s10, %s209_s28  }
  0x5e   : > { %p1193_p5 = scmp.ne.s32.totalorder %s1188_s26, 0 }
  0x5f   : > { %s1108_s12 = sand.u32 (!%p1193_p5), 1, %s898_s19   ;;  %p1194_p0 = scmp.ne.s32.totalorder (!%p1193_p5), %s1186_s24, 0 }
  0x60   : > { %228 = sbr.rel (%p1193_p5) target bundleno = 587 (0x24b), region = 40  ;;  %s565_s13 = sshll.u32 (!%p1193_p5), %s1108_s12, 3 }
  0x61   : > { %s231_s29 = scalar_lea.sflag (!%p1193_p5), [#allocation3], %s1108_s12  ;;  %s234_s17 = scalar_lea.vmem (!%p1193_p5), [#allocation2], %s565_s13 }
  0x67   : > { %881 = dma.done.wait (%p1194_p0), %s231_s29, 128  }
  0x68   : > { %883 = vsyncadd (%p1194_p0), %s231_s29, 4294967168  ;;  %p1195_p10 = scmp.eq.s32.totalorder %s968_s22, 0 }
  0x6a   : > { %885 = dma.done.wait (%p1195_p10), [#allocation6], 2560   ;;  %p1196_p11 = pmov %p1195_p10 }
  0x6b   : > { %v913_v0 = vmov 0.0|0.0   ;;  %vm914_vm0 = vmmov 0   ;;  %v915_v1 = vmov 0.0   ;;  %v270_v2 = vld [vmem:[#allocation5] sm:$0xff]  ;;  %v271_v3 = vld [vmem:[#allocation5 + $0x8] sm:$0xff]  ;;  %v272_v4 = vld [vmem:[#allocation5 + $0x10] sm:$0xff] }
  0x6c   : > { %887 = vsyncadd (%p1196_p11), [#allocation6], 4294964736  ;;  %644 = vmatprep.subr.bf16.mxu0 %v913_v0  ;;  %606 = vmatprep.mubr.msk.f32.mxu0 %vm914_vm0, %v915_v1  ;;  %v645_v5 = vpack.c.bf16 %v271_v3, %v270_v2  ;;  %v273_v6 = vld [vmem:[#allocation5 + $0x18] sm:$0xff]  ;;  %vm281_vm1 = vcmask 261120   ;;  %v360_v9 = vld [vmem:[#allocation7] sm:$0xff]  ;;  %s573_s11 = sshll.u32 %s968_s22, 7 }
  0x6d   : > { %650 = vmatprep.subr.bf16.mxu1 %v913_v0  ;;  %641 = vmatprep.mubr.msk.f32.mxu1 %vm914_vm0, %v915_v1  ;;  %v648_v7 = vpack.c.bf16 %v273_v6, %v272_v4  ;;  %v269_v8 = vld [vmem:[%s234_s17] sm:$0xff]  ;;  %v361_v10 = vld [vmem:[#allocation7 + $0x8] sm:$0xff]  ;;  %v364_v15 = vld [vmem:[#allocation7 + $0x20] sm:$0xff]  ;;  %s268_s28 = scalar_lea.vmem [#allocation8], %s565_s13  ;;  %s1134_s15 = scalar_lea.hbm %s1182_s5, %s573_s11 }
  0x6e   : > { %646 = vmatpush3.bf16.msra.mxu0 %v645_v5  ;;  %v651_v11 = vpack.c.bf16 %v361_v10, %v360_v9  ;;  %v362_v12 = vld [vmem:[#allocation7 + $0x10] sm:$0xff]  ;;  %v363_v13 = vld [vmem:[#allocation7 + $0x18] sm:$0xff]  ;;  %v365_v16 = vld [vmem:[#allocation7 + $0x28] sm:$0xff]  ;;  %s468_s7 = sshll.u32 %s268_s28, 4  ;;  %s455_s16 = scalar_lea.sflag [#allocation4], %s1108_s12  ;;  %s1136_s7 = int_to_ptr.vmem [resolvable:$true] %s468_s7 }
  0x6f   : > { %647 = vmatprep.subr.bf16.mxu0 %v913_v0  ;;  %v654_v14 = vpack.c.bf16 %v363_v13, %v362_v12  ;;  %v657_v17 = vpack.c.bf16 %v365_v16, %v364_v15  ;;  %v366_v18 = vld [vmem:[#allocation7 + $0x30] sm:$0xff]  ;;  %v367_v19 = vld [vmem:[#allocation7 + $0x38] sm:$0xff]  ;;  %v368_v21 = vld [vmem:[#allocation7 + $0x40] sm:$0xff]  ;;  %s836_s9 = scalar_lea.vmem %s1136_s7, 128  ;;  %s916_s22 = smov [#allocation8]  }
  0x70   : > { %652 = vmatpush3.bf16.msra.mxu1 %v651_v11  ;;  %v660_v20 = vpack.c.bf16 %v367_v19, %v366_v18  ;;  %v369_v22 = vld [vmem:[#allocation7 + $0x48] sm:$0xff]  ;;  %v370_v24 = vld [vmem:[#allocation7 + $0x50] sm:$0xff]  ;;  %v371_v25 = vld [vmem:[#allocation7 + $0x58] sm:$0xff]  ;;  %p837_p1 = scmp.ne.s32.totalorder %s1136_s7, %s836_s9  ;;  %s840_s13 = sshll.u32 %s916_s22, 4  ;;  %s841_s13 = int_to_ptr.vmem [resolvable:$false] %s840_s13 }
  0x71   : > { %653 = vmatprep.subr.bf16.mxu1 %v913_v0  ;;  %v663_v23 = vpack.c.bf16 %v369_v22, %v368_v21  ;;  %v666_v26 = vpack.c.bf16 %v371_v25, %v370_v24  ;;  %v372_v27 = vld [vmem:[#allocation7 + $0x60] sm:$0xff]  ;;  %v373_v28 = vld [vmem:[#allocation7 + $0x68] sm:$0xff]  ;;  %v374_v30 = vld [vmem:[#allocation7 + $0x70] sm:$0xff]  ;;  %s842_s29 = scalar_lea.vmem %s841_s13, 256  ;;  %p843_p8 = scmp.lt.s32.totalorder %s1136_s7, %s841_s13 }
  0x72   : > { %649 = vmatpush3.bf16.msra.mxu0 %v648_v7  ;;  %v669_v29 = vpack.c.bf16 %v373_v28, %v372_v27  ;;  %v375_v31 = vld [vmem:[#allocation7 + $0x78] sm:$0xff]  ;;  %v569_v33 = vld [vmem:[%s1179_s2] ss:$0 sm:$0xff]  ;;  %p838_p2 = pnand %p837_p1, %p1059_p4  ;;  %p844_p13 = scmp.lt.s32.totalorder %s842_s29, %s836_s9 }
  0x73   : > { %v672_v32 = vpack.c.bf16 %v375_v31, %v374_v30  ;;  %v571_v42 = vld [vmem:[%s1181_s4] ss:$0 sm:$0xff] }
  0x74   : > { %655 = vmatpush3.bf16.msra.mxu1 %v654_v14  ;;  %p839_p6 = pneg %p838_p2  ;;  %p845_p3 = por %p844_p13, %p843_p8 }
  0x75   : > { %607 = vmatmul.mubr.msk.f32.vlgmr.msra.gmra.mrb[0].mxu0 %vm281_vm1, %v269_v8  ;;  %656 = vmatprep.subr.bf16.mxu1 %v913_v0 }
  0x76   : > { %p846_p7 = pnand %p845_p3, %p839_p6 }
  0x78   : > { %658 = vmatpush3.bf16.msra.mxu1 %v657_v17 }
  0x79   : > { %659 = vmatprep.subr.bf16.mxu1 %v913_v0 }
  0x7c   : > { %661 = vmatpush3.bf16.msra.mxu1 %v660_v20 }
  0x7d   : > { %662 = vmatprep.subr.bf16.mxu1 %v913_v0 }
  0x80   : > { %664 = vmatpush3.bf16.msra.mxu1 %v663_v23 }
  0x81   : > { %665 = vmatprep.subr.bf16.mxu1 %v913_v0 }
  0x84   : > { %667 = vmatpush3.bf16.msra.mxu1 %v666_v26 }
  0x85   : > { %668 = vmatprep.subr.bf16.mxu1 %v913_v0 }
  0x88   : > { %670 = vmatpush3.bf16.msra.mxu1 %v669_v29 }
  0x89   : > { %671 = vmatprep.subr.bf16.mxu1 %v913_v0 }
  0x8c   : > { %673 = vmatpush3.bf16.msra.mxu1 %v672_v32 }
 0x148   : > { %v351_v34 = vpop.f32.mrb[0].mxu0 }
 0x149   : > { %v352_v35 = vadd.f32 %v569_v33, %v351_v34  ;;  %v608_v36 = vpop.f32.mrb[1].mxu0 }
 0x14b   : > { %v355_v37 = vsub.f32 0.0, %v352_v35 }
 0x14d   : > { %v356_v38 = vmul.f32 1.442695, %v355_v37 }
 0x14f   : > { %746 = vpow2.f32 %v356_v38 }
 0x159   : > { %v747_v39 = vpop.eup %746 }
 0x15a   : > { %v358_v40 = vadd.f32 1.0, %v747_v39 }
 0x15c   : > { %748 = vrcp.f32 %v358_v40 }
 0x166   : > { %v749_v41 = vpop.eup %748 }
 0x167   : > { %642 = vmatmul.mubr.f32.vlgmr.msra.gmra.mrb[0].mxu1 %v749_v41 }
 0x23a   : > { %v449_v43 = vpop.f32.mrb[0].mxu1 }
 0x23b   : > { %v450_v44 = vadd.f32 %v571_v42, %v449_v43  ;;  %v643_v45 = vpop.f32.mrb[1].mxu1 }
 0x23d   : > { %453 = vst [vmem:[%s268_s28] sm:$0xff] %v450_v44 }
 0x23e   : > { %849 = shalt.err (!%p846_p7)
}
 0x23f   : > { %s850_s12 = scalar_lea.hbm %s1134_s15, 128  ;;  %s854_s26 = scalar_lea.hbm %s1182_s5, 384 }
 0x240   : > { %p851_p9 = scmp.ne.s32.totalorder %s1134_s15, %s850_s12  ;;  %p855_p0 = scmp.lt.u32.totalorder %s1134_s15, %s1182_s5 }
 0x241   : > { %p856_p10 = scmp.lt.u32.totalorder %s854_s26, %s850_s12  ;;  %p858_p1 = scmp.lt.u32.totalorder %s850_s12, %s1134_s15 }
 0x242   : > { %p852_p12 = pnand %p851_p9, %p1059_p4 }
 0x243   : > { %p857_p11 = por %p856_p10, %p855_p0 }
 0x244   : > { %p853_p5 = pneg %p852_p12 }
 0x245   : > { %p859_p2 = por %p858_p1, %p857_p11 }
 0x247   : > { %p860_p6 = pnand %p859_p2, %p853_p5 }
 0x249   : > { %863 = shalt.err (!%p860_p6)
}
 0x24a   : > { %684 = dma.vmem_to_hbm [thread:$0]  (%p1059_p4), %s1136_s7, 128, %s1134_s15, %s455_s16  }
 0x24b PF: > { %p706_p8 = scmp.ge.s32.totalorder %s906_s21, 2  ;;  %s480_s11 = sand.u32 1, %s894_s18  }
 0x24c   : > { %p1197_p13 = scmp.ne.s32.totalorder %s1187_s25, 0  ;;  %s481_s28 = scalar_lea.sflag [#allocation4], %s480_s11 }
 0x24e   : > { %p698_p3 = pnand %p706_p8, %p1197_p13 }
 0x250   : > { %889 = dma.done.wait (!%p698_p3), %s481_s28, 128  }
 0x251   : > { %891 = vsyncadd (!%p698_p3), %s481_s28, 4294967168  ;;  %p19_p7 = scmp.ge.s32.totalorder %s1049_s14, 5   ;;  %s1198_s18 = smov %s898_s19 }
 0x252   : > { %s1199_s19 = smov %s902_s20  ;;  %s1200_s20 = smov %s1065_s27 }
 0x253   : > { %s1201_s21 = smov %s1049_s14  ;;  %21 = sbr.rel (!%p19_p7) target bundleno = 6 (0x6), region = 93 }
 0x25a   :  { %486 = vsyncpa [#allocation3], 1 }
 0x25b   :  { %488 = vsyncpa [#allocation3 + $0x1], 1 }
 0x25c   :  { %489 = vsyncpa [#allocation6], 1 }
 0x25d   :  { %490 = vsyncpa [#allocation4], 1 }
 0x25e   :  { %492 = vsyncpa [#allocation4 + $0x1], 1 }

// kernel: tpu_custom_call.1
= control target key start
LH: loop header
LB: loop body
LE: loop exit
PB: predicated region body
PF: predicated region fallthrough
CT: control target
= control target key end

     0   :  { %10 = vsyncpa [#allocation3], 0  ;;  %s1177_s0 = inlined_call_operand.hbm [shape: f32[24,32], index: 0, kind: input, shape index: {}]   ;;  %s1178_s1 = inlined_call_operand.hbm [shape: f32[32,128], index: 1, kind: input, shape index: {}]   ;;  %s1179_s2 = inlined_call_operand.vmem [shape: f32[1,128], index: 2, kind: input, shape index: {}]   ;;  %s1180_s3 = inlined_call_operand.hbm [shape: f32[128,128], index: 3, kind: input, shape index: {}]   ;;  %s1181_s4 = inlined_call_operand.vmem [shape: f32[1,128], index: 4, kind: input, shape index: {}]   ;;  %s1182_s5 = inlined_call_operand.hbm [shape: f32[24,128], index: 5, kind: output, shape index: {}]  }
   0x1   :  { %12 = vsyncpa [#allocation3 + $0x1], 0 }
   0x2   :  { %13 = vsyncpa [#allocation6], 0 }
   0x3   :  { %14 = vsyncpa [#allocation4], 0 }
   0x4   :  { %16 = vsyncpa [#allocation4 + $0x1], 0  ;;  %s947_s18 = smov 0   ;;  %s949_s19 = smov 0  }
   0x5   :  { %s951_s20 = smov 0   ;;  %s953_s21 = smov 0  }
   0x6 LB: > { %s968_s22 = sadd.s32 4294967295, %s906_s21   ;;  %s557_s23 = sadd.s32 4294967294, %s906_s21   ;;  %s906_s21 = sphi %s953_s21, %s1201_s21   ;;  %s902_s20 = sphi %s951_s20, %s1200_s20   ;;  %s898_s19 = sphi %s949_s19, %s1199_s19   ;;  %s894_s18 = sphi %s947_s18, %s1198_s18  }
   0x7   : > { %p42_p0 = scmp.ne.s32.totalorder %s898_s19, %s894_s18  ;;  %p1183_p1 = scmp.eq.s32.totalorder %s968_s22, 0 }
   0x8   : > { %p156_p3 = scmp.eq.s32.totalorder %s557_s23, 2  ;;  %p558_p5 = scmp.ge.s32.totalorder %s906_s21, 1 }
   0x9   : > { %p977_p4 = por %p1183_p1, %p42_p0  ;;  %p163_p7 = scmp.lt.s32.totalorder %s906_s21, 4 }
   0xa   : > { %p982_p6 = por %p156_p3, %p42_p0  ;;  %s908_s27 = smov [#allocation5]  }
   0xb   : > { %s1186_s24 = scalar_select %p977_p4, 1, 0 }
   0xc   : > { %s1187_s25 = scalar_select %p982_p6, 1, 0 }
   0xd   : > { %p987_p8 = pnand %p558_p5, %p163_p7  ;;  %s175_s28 = sshll.u32 %s908_s27, 4  ;;  %s176_s28 = int_to_ptr.vmem [resolvable:$true] %s175_s28 }
   0xe   : > { %s909_s30 = smov [#allocation7]   ;;  %s750_s9 = scalar_lea.hbm %s1178_s1, 512 }
   0xf   : > { %s1188_s26 = scalar_select %p987_p8, 1, 0 }
  0x10   : > { %p686_p9 = pneg %p987_p8  ;;  %s191_s6 = sshll.u32 %s909_s30, 4  ;;  %s999_s6 = int_to_ptr.vmem [resolvable:$true] %s191_s6 }
  0x11   : > { %p751_p11 = scmp.ne.s32.totalorder %s1178_s1, %s750_s9  ;;  %p757_p3 = scmp.lt.u32.totalorder %s750_s9, %s1178_s1 }
  0x12   : > { %p995_p10 = pnand %p686_p9, %p1183_p1 }
  0x14   : > { %p752_p12 = pneg %p995_p10 }
  0x16   : > { %p753_p13 = pnand %p752_p12, %p751_p11 }
  0x18   : > { %p754_p0 = pneg %p753_p13 }
  0x1a   : > { %p759_p5 = pnand %p757_p3, %p754_p0 }
  0x1c   : > { %762 = shalt.err (!%p759_p5)
}
  0x1d   : > { %s763_s14 = scalar_lea.vmem %s176_s28, 512  ;;  %p771_p2 = scmp.lt.s32.totalorder %s176_s28, %s176_s28 }
  0x1e   : > { %p764_p7 = scmp.ne.s32.totalorder %s176_s28, %s763_s14  ;;  %p772_p6 = scmp.lt.s32.totalorder %s763_s14, %s763_s14 }
  0x20   : > { %p766_p9 = pnand %p764_p7, %p752_p12  ;;  %p773_p4 = por %p772_p6, %p771_p2 }
  0x22   : > { %p767_p1 = pneg %p766_p9 }
  0x24   : > { %p774_p8 = pnand %p773_p4, %p767_p1 }
  0x26   : > { %777 = shalt.err (!%p774_p8)
}
  0x27   : > { %s910_s15 = smov 128   ;;  %s911_s16 = smov 8  }
  0x28   : > { %689 = dma.hbm_to_vmem [thread:$0]  (!%p995_p10), %s1178_s1, 512, %s176_s28, [#allocation6], %s910_s15, %s910_s15, %s911_s16  }
  0x29   : > { %s778_s7 = scalar_lea.hbm %s1180_s3, 2048 }
  0x2a   : > { %p779_p11 = scmp.ne.s32.totalorder %s1180_s3, %s778_s7  ;;  %p785_p4 = scmp.lt.u32.totalorder %s778_s7, %s1180_s3 }
  0x2c   : > { %p781_p1 = pnand %p779_p11, %p752_p12 }
  0x2e   : > { %p782_p2 = pneg %p781_p1 }
  0x30   : > { %p787_p6 = pnand %p785_p4, %p782_p2 }
  0x32   : > { %790 = shalt.err (!%p787_p6)
}
  0x33   : > { %s791_s28 = scalar_lea.vmem %s999_s6, 2048  ;;  %p799_p3 = scmp.lt.s32.totalorder %s999_s6, %s999_s6 }
  0x34   : > { %p792_p8 = scmp.ne.s32.totalorder %s999_s6, %s791_s28  ;;  %p800_p5 = scmp.lt.s32.totalorder %s791_s28, %s791_s28 }
  0x36   : > { %p794_p13 = pnand %p792_p8, %p752_p12  ;;  %p801_p7 = por %p800_p5, %p799_p3 }
  0x38   : > { %p795_p0 = pneg %p794_p13 }
  0x3a   : > { %p802_p9 = pnand %p801_p7, %p795_p0 }
  0x3c   : > { %805 = shalt.err (!%p802_p9)
}
  0x3d   : > { %692 = dma.hbm_to_vmem [thread:$0]  (!%p995_p10), %s1180_s3, 2048, %s999_s6, [#allocation6], %s910_s15, %s910_s15, %s911_s16  }
  0x3e   : > { %s1049_s14 = sadd.s32 1, %s906_s21   ;;  %s29_s29 = sadd.s32 1, %s902_s20 }
  0x3f   : > { %s26_s17 = ssub.s32 %s906_s21, %s1049_s14  ;;  %p36_p12 = scmp.ne.s32.totalorder %s902_s20, %s898_s19 }
  0x40   : > { %p27_p11 = scmp.eq.s32.totalorder %s26_s17, 0  ;;  %p37_p1 = scmp.eq.s32.totalorder %s906_s21, 0 }
  0x41   : > { %p1190_p2 = scmp.eq.s32.totalorder %s968_s22, 2  ;;  %p703_p6 = scmp.lt.s32.totalorder %s906_s21, 3 }
  0x42   : > { %s1065_s27 = scalar_select %p27_p11, %s902_s20, %s29_s29  }
  0x43   : > { %p1059_p4 = por %p1190_p2, %p36_p12  ;;  %p38_p8 = por %p37_p1, %p36_p12 }
  0x44   : > { %s208_s30 = sand.u32 1, %s902_s20   ;;  %s563_s6 = sshll.u32 %s906_s21, 7 }
  0x45   : > { %s562_s7 = sshll.u32 %s208_s30, 3  ;;  %s1072_s8 = scalar_lea.hbm %s1177_s0, %s563_s6 }
  0x46   : > { %s212_s9 = scalar_lea.vmem [#allocation2], %s562_s7  ;;  %p1076_p10 = pnand %p703_p6, %p38_p8 }
  0x47   : > { %s219_s10 = sshll.u32 %s212_s9, 4  ;;  %s209_s28 = scalar_lea.sflag [#allocation3], %s208_s30  ;;  %s1074_s10 = int_to_ptr.vmem [resolvable:$true] %s219_s10 }
  0x48   : > { %s806_s12 = scalar_lea.hbm %s1072_s8, 128  ;;  %p808_p0 = pneg %p1076_p10 }
  0x49   : > { %p807_p13 = scmp.ne.s32.totalorder %s1072_s8, %s806_s12  ;;  %s811_s17 = scalar_lea.hbm %s1177_s0, 384 }
  0x4a   : > { %p812_p7 = scmp.lt.u32.totalorder %s1072_s8, %s1177_s0  ;;  %p813_p9 = scmp.lt.u32.totalorder %s811_s17, %s806_s12 }
  0x4b   : > { %p809_p3 = pnand %p808_p0, %p807_p13  ;;  %p815_p11 = scmp.lt.u32.totalorder %s806_s12, %s1072_s8 }
  0x4c   : > { %p814_p12 = por %p813_p9, %p812_p7 }
  0x4d   : > { %p810_p5 = pneg %p809_p3 }
  0x4e   : > { %p816_p1 = por %p815_p11, %p814_p12 }
  0x50   : > { %p817_p2 = pnand %p816_p1, %p810_p5 }
  0x52   : > { %820 = shalt.err (!%p817_p2)
}
  0x53   : > { %s821_s30 = scalar_lea.vmem %s1074_s10, 128  ;;  %s912_s15 = smov [#allocation2]  }
  0x54   : > { %p822_p6 = scmp.ne.s32.totalorder %s1074_s10, %s821_s30  ;;  %s826_s16 = sshll.u32 %s912_s15, 4  ;;  %s827_s16 = int_to_ptr.vmem [resolvable:$false] %s826_s16 }
  0x55   : > { %s828_s9 = scalar_lea.vmem %s827_s16, 256  ;;  %p829_p3 = scmp.lt.s32.totalorder %s1074_s10, %s827_s16 }
  0x56   : > { %p824_p8 = pnand %p822_p6, %p808_p0  ;;  %p830_p7 = scmp.lt.s32.totalorder %s828_s9, %s821_s30 }
  0x58   : > { %p825_p13 = pneg %p824_p8  ;;  %p831_p9 = por %p830_p7, %p829_p3 }
  0x5a   : > { %p832_p12 = pnand %p831_p9, %p825_p13 }
  0x5c   : > { %835 = shalt.err (!%p832_p12)
}
  0x5d   : > { %696 = dma.hbm_to_vmem [thread:$0]  (!%p1076_p10), %s1072_s8, 128, %s1074_s10, %s209_s28  }
  0x5e   : > { %p1193_p5 = scmp.ne.s32.totalorder %s1188_s26, 0 }
  0x5f   : > { %s1108_s12 = sand.u32 (!%p1193_p5), 1, %s898_s19   ;;  %p1194_p0 = scmp.ne.s32.totalorder (!%p1193_p5), %s1186_s24, 0 }
  0x60   : > { %228 = sbr.rel (%p1193_p5) target bundleno = 587 (0x24b), region = 40  ;;  %s565_s13 = sshll.u32 (!%p1193_p5), %s1108_s12, 3 }
  0x61   : > { %s231_s29 = scalar_lea.sflag (!%p1193_p5), [#allocation3], %s1108_s12  ;;  %s234_s17 = scalar_lea.vmem (!%p1193_p5), [#allocation2], %s565_s13 }
  0x67   : > { %881 = dma.done.wait (%p1194_p0), %s231_s29, 128  }
  0x68   : > { %883 = vsyncadd (%p1194_p0), %s231_s29, 4294967168  ;;  %p1195_p10 = scmp.eq.s32.totalorder %s968_s22, 0 }
  0x6a   : > { %885 = dma.done.wait (%p1195_p10), [#allocation6], 2560   ;;  %p1196_p11 = pmov %p1195_p10 }
  0x6b   : > { %v913_v0 = vmov 0.0|0.0   ;;  %vm914_vm0 = vmmov 0   ;;  %v915_v1 = vmov 0.0   ;;  %v270_v2 = vld [vmem:[#allocation5] sm:$0xff]  ;;  %v271_v3 = vld [vmem:[#allocation5 + $0x8] sm:$0xff]  ;;  %v272_v4 = vld [vmem:[#allocation5 + $0x10] sm:$0xff] }
  0x6c   : > { %887 = vsyncadd (%p1196_p11), [#allocation6], 4294964736  ;;  %644 = vmatprep.subr.bf16.mxu0 %v913_v0  ;;  %606 = vmatprep.mubr.msk.f32.mxu0 %vm914_vm0, %v915_v1  ;;  %v645_v5 = vpack.c.bf16 %v271_v3, %v270_v2  ;;  %v273_v6 = vld [vmem:[#allocation5 + $0x18] sm:$0xff]  ;;  %vm281_vm1 = vcmask 261120   ;;  %v360_v9 = vld [vmem:[#allocation7] sm:$0xff]  ;;  %s573_s11 = sshll.u32 %s968_s22, 7 }
  0x6d   : > { %650 = vmatprep.subr.bf16.mxu1 %v913_v0  ;;  %641 = vmatprep.mubr.msk.f32.mxu1 %vm914_vm0, %v915_v1  ;;  %v648_v7 = vpack.c.bf16 %v273_v6, %v272_v4  ;;  %v269_v8 = vld [vmem:[%s234_s17] sm:$0xff]  ;;  %v361_v10 = vld [vmem:[#allocation7 + $0x8] sm:$0xff]  ;;  %v364_v15 = vld [vmem:[#allocation7 + $0x20] sm:$0xff]  ;;  %s268_s28 = scalar_lea.vmem [#allocation8], %s565_s13  ;;  %s1134_s15 = scalar_lea.hbm %s1182_s5, %s573_s11 }
  0x6e   : > { %646 = vmatpush3.bf16.msra.mxu0 %v645_v5  ;;  %v651_v11 = vpack.c.bf16 %v361_v10, %v360_v9  ;;  %v362_v12 = vld [vmem:[#allocation7 + $0x10] sm:$0xff]  ;;  %v363_v13 = vld [vmem:[#allocation7 + $0x18] sm:$0xff]  ;;  %v365_v16 = vld [vmem:[#allocation7 + $0x28] sm:$0xff]  ;;  %s468_s7 = sshll.u32 %s268_s28, 4  ;;  %s455_s16 = scalar_lea.sflag [#allocation4], %s1108_s12  ;;  %s1136_s7 = int_to_ptr.vmem [resolvable:$true] %s468_s7 }
  0x6f   : > { %647 = vmatprep.subr.bf16.mxu0 %v913_v0  ;;  %v654_v14 = vpack.c.bf16 %v363_v13, %v362_v12  ;;  %v657_v17 = vpack.c.bf16 %v365_v16, %v364_v15  ;;  %v366_v18 = vld [vmem:[#allocation7 + $0x30] sm:$0xff]  ;;  %v367_v19 = vld [vmem:[#allocation7 + $0x38] sm:$0xff]  ;;  %v368_v21 = vld [vmem:[#allocation7 + $0x40] sm:$0xff]  ;;  %s836_s9 = scalar_lea.vmem %s1136_s7, 128  ;;  %s916_s22 = smov [#allocation8]  }
  0x70   : > { %652 = vmatpush3.bf16.msra.mxu1 %v651_v11  ;;  %v660_v20 = vpack.c.bf16 %v367_v19, %v366_v18  ;;  %v369_v22 = vld [vmem:[#allocation7 + $0x48] sm:$0xff]  ;;  %v370_v24 = vld [vmem:[#allocation7 + $0x50] sm:$0xff]  ;;  %v371_v25 = vld [vmem:[#allocation7 + $0x58] sm:$0xff]  ;;  %p837_p1 = scmp.ne.s32.totalorder %s1136_s7, %s836_s9  ;;  %s840_s13 = sshll.u32 %s916_s22, 4  ;;  %s841_s13 = int_to_ptr.vmem [resolvable:$false] %s840_s13 }
  0x71   : > { %653 = vmatprep.subr.bf16.mxu1 %v913_v0  ;;  %v663_v23 = vpack.c.bf16 %v369_v22, %v368_v21  ;;  %v666_v26 = vpack.c.bf16 %v371_v25, %v370_v24  ;;  %v372_v27 = vld [vmem:[#allocation7 + $0x60] sm:$0xff]  ;;  %v373_v28 = vld [vmem:[#allocation7 + $0x68] sm:$0xff]  ;;  %v374_v30 = vld [vmem:[#allocation7 + $0x70] sm:$0xff]  ;;  %s842_s29 = scalar_lea.vmem %s841_s13, 256  ;;  %p843_p8 = scmp.lt.s32.totalorder %s1136_s7, %s841_s13 }
  0x72   : > { %649 = vmatpush3.bf16.msra.mxu0 %v648_v7  ;;  %v669_v29 = vpack.c.bf16 %v373_v28, %v372_v27  ;;  %v375_v31 = vld [vmem:[#allocation7 + $0x78] sm:$0xff]  ;;  %v569_v33 = vld [vmem:[%s1179_s2] ss:$0 sm:$0xff]  ;;  %p838_p2 = pnand %p837_p1, %p1059_p4  ;;  %p844_p13 = scmp.lt.s32.totalorder %s842_s29, %s836_s9 }
  0x73   : > { %v672_v32 = vpack.c.bf16 %v375_v31, %v374_v30  ;;  %v571_v42 = vld [vmem:[%s1181_s4] ss:$0 sm:$0xff] }
  0x74   : > { %655 = vmatpush3.bf16.msra.mxu1 %v654_v14  ;;  %p839_p6 = pneg %p838_p2  ;;  %p845_p3 = por %p844_p13, %p843_p8 }
  0x75   : > { %607 = vmatmul.mubr.msk.f32.vlgmr.msra.gmra.mrb[0].mxu0 %vm281_vm1, %v269_v8  ;;  %656 = vmatprep.subr.bf16.mxu1 %v913_v0 }
  0x76   : > { %p846_p7 = pnand %p845_p3, %p839_p6 }
  0x78   : > { %658 = vmatpush3.bf16.msra.mxu1 %v657_v17 }
  0x79   : > { %659 = vmatprep.subr.bf16.mxu1 %v913_v0 }
  0x7c   : > { %661 = vmatpush3.bf16.msra.mxu1 %v660_v20 }
  0x7d   : > { %662 = vmatprep.subr.bf16.mxu1 %v913_v0 }
  0x80   : > { %664 = vmatpush3.bf16.msra.mxu1 %v663_v23 }
  0x81   : > { %665 = vmatprep.subr.bf16.mxu1 %v913_v0 }
  0x84   : > { %667 = vmatpush3.bf16.msra.mxu1 %v666_v26 }
  0x85   : > { %668 = vmatprep.subr.bf16.mxu1 %v913_v0 }
  0x88   : > { %670 = vmatpush3.bf16.msra.mxu1 %v669_v29 }
  0x89   : > { %671 = vmatprep.subr.bf16.mxu1 %v913_v0 }
  0x8c   : > { %673 = vmatpush3.bf16.msra.mxu1 %v672_v32 }
 0x148   : > { %v351_v34 = vpop.f32.mrb[0].mxu0 }
 0x149   : > { %v352_v35 = vadd.f32 %v569_v33, %v351_v34  ;;  %v608_v36 = vpop.f32.mrb[1].mxu0 }
 0x14b   : > { %v355_v37 = vsub.f32 0.0, %v352_v35 }
 0x14d   : > { %v356_v38 = vmul.f32 1.442695, %v355_v37 }
 0x14f   : > { %746 = vpow2.f32 %v356_v38 }
 0x159   : > { %v747_v39 = vpop.eup %746 }
 0x15a   : > { %v358_v40 = vadd.f32 1.0, %v747_v39 }
 0x15c   : > { %748 = vrcp.f32 %v358_v40 }
 0x166   : > { %v749_v41 = vpop.eup %748 }
 0x167   : > { %642 = vmatmul.mubr.f32.vlgmr.msra.gmra.mrb[0].mxu1 %v749_v41 }
 0x23a   : > { %v449_v43 = vpop.f32.mrb[0].mxu1 }
 0x23b   : > { %v450_v44 = vadd.f32 %v571_v42, %v449_v43  ;;  %v643_v45 = vpop.f32.mrb[1].mxu1 }
 0x23d   : > { %453 = vst [vmem:[%s268_s28] sm:$0xff] %v450_v44 }
 0x23e   : > { %849 = shalt.err (!%p846_p7)
}
 0x23f   : > { %s850_s12 = scalar_lea.hbm %s1134_s15, 128  ;;  %s854_s26 = scalar_lea.hbm %s1182_s5, 384 }
 0x240   : > { %p851_p9 = scmp.ne.s32.totalorder %s1134_s15, %s850_s12  ;;  %p855_p0 = scmp.lt.u32.totalorder %s1134_s15, %s1182_s5 }
 0x241   : > { %p856_p10 = scmp.lt.u32.totalorder %s854_s26, %s850_s12  ;;  %p858_p1 = scmp.lt.u32.totalorder %s850_s12, %s1134_s15 }
 0x242   : > { %p852_p12 = pnand %p851_p9, %p1059_p4 }
 0x243   : > { %p857_p11 = por %p856_p10, %p855_p0 }
 0x244   : > { %p853_p5 = pneg %p852_p12 }
 0x245   : > { %p859_p2 = por %p858_p1, %p857_p11 }
 0x247   : > { %p860_p6 = pnand %p859_p2, %p853_p5 }
 0x249   : > { %863 = shalt.err (!%p860_p6)
}
 0x24a   : > { %684 = dma.vmem_to_hbm [thread:$0]  (%p1059_p4), %s1136_s7, 128, %s1134_s15, %s455_s16  }
 0x24b PF: > { %p706_p8 = scmp.ge.s32.totalorder %s906_s21, 2  ;;  %s480_s11 = sand.u32 1, %s894_s18  }
 0x24c   : > { %p1197_p13 = scmp.ne.s32.totalorder %s1187_s25, 0  ;;  %s481_s28 = scalar_lea.sflag [#allocation4], %s480_s11 }
 0x24e   : > { %p698_p3 = pnand %p706_p8, %p1197_p13 }
 0x250   : > { %889 = dma.done.wait (!%p698_p3), %s481_s28, 128  }
 0x251   : > { %891 = vsyncadd (!%p698_p3), %s481_s28, 4294967168  ;;  %p19_p7 = scmp.ge.s32.totalorder %s1049_s14, 5   ;;  %s1198_s18 = smov %s898_s19 }
 0x252   : > { %s1199_s19 = smov %s902_s20  ;;  %s1200_s20 = smov %s1065_s27 }
 0x253   : > { %s1201_s21 = smov %s1049_s14  ;;  %21 = sbr.rel (!%p19_p7) target bundleno = 6 (0x6), region = 93 }
 0x25a   :  { %486 = vsyncpa [#allocation3], 1 }
 0x25b   :  { %488 = vsyncpa [#allocation3 + $0x1], 1 }
 0x25c   :  { %489 = vsyncpa [#allocation6], 1 }
 0x25d   :  { %490 = vsyncpa [#allocation4], 1 }
 0x25e   :  { %492 = vsyncpa [#allocation4 + $0x1], 1 }

</bundles_post_ra>
